<compile_context>
chip_gen: v7x
topology: tpu7x:2x2x1
jax: 0.10.0
libtpu: 0.0.40
codegen_flags: <defaults>
</compile_context>

<pallas_src>
import jax
import jax.numpy as jnp
from jax.experimental import pallas as pl
from jax.experimental.pallas import tpu as pltpu


def _round_up(v, m):
    return (v + m - 1) // m * m


def _choose_batch_tiling(batch, block_batch):
    """Pick (tile_rows, grid_steps) with <8 rows of padding waste per step and
    >=2 steps for B > 8 (so v7x megacore gets both TensorCores busy)."""
    n_steps = max(1, pl.cdiv(batch, block_batch))
    if n_steps == 1 and batch > 8:
        n_steps = 2
    tb = _round_up(pl.cdiv(batch, n_steps), 8)
    return tb, pl.cdiv(batch, tb)


def _mlp_kernel(x_ref, w1_ref, b1_ref, w2_ref, b2_ref, out_ref):
    # layer1: x @ W1 on the MXU (bf16 operands, f32 accumulation) + b1 (f32).
    x = x_ref[...].astype(w1_ref.dtype)                 # (TB, K) f32 -> bf16
    h = jnp.dot(x, w1_ref[...], preferred_element_type=jnp.float32)  # (TB, Hp)
    # layer2: bias + tanh in f32 (EUP; v5e has no bf16 elementwise path).
    h = jnp.tanh(h + b1_ref[...])
    # layer3: tanh(h) @ W2 (cast back to bf16 for the MXU) + b2.
    o = jnp.dot(h.astype(w2_ref.dtype), w2_ref[...],
                preferred_element_type=jnp.float32)      # (TB, N)
    out_ref[...] = (o + b2_ref[...]).astype(out_ref.dtype)


def prepare_params(w1, b1, w2, b2, *, mxu_dtype=jnp.bfloat16):
    """One-time weight prep: cast to bf16 and zero-pad the hidden dim to 128
    lanes.  Padded hidden columns stay exactly zero through bias+tanh and
    contribute nothing to layer3 (matching zero rows in padded W2).
    Call this once (e.g. at init) and reuse the result every forward."""
    k, h = w1.shape
    n = w2.shape[1]
    hp = _round_up(h, 128)
    w1_p = jnp.pad(w1.astype(mxu_dtype), ((0, 0), (0, hp - h)))
    b1_p = jnp.pad(jnp.reshape(b1, (1, h)).astype(jnp.float32),
                   ((0, 0), (0, hp - h)))
    w2_p = jnp.pad(w2.astype(mxu_dtype), ((0, hp - h), (0, 0)))
    b2_p = jnp.reshape(b2, (1, n)).astype(jnp.float32)
    return w1_p, b1_p, w2_p, b2_p


def module_net_forward(x, params, *, block_batch=1024):
    """Forward of Linear -> Tanh -> Linear.

    x      : (B, num_input) f32  (passed unpadded, uncast)
    params : output of prepare_params(): (w1_p, b1_p, w2_p, b2_p)
    Returns (B, num_output) f32.
    """
    w1_p, b1_p, w2_p, b2_p = params
    b, k = x.shape
    kw, hp = w1_p.shape
    assert k == kw, (k, kw)
    n = w2_p.shape[1]

    tb, n_steps = _choose_batch_tiling(b, block_batch)

    cost = pl.CostEstimate(
        flops=2 * b * (k * hp + hp * n),
        transcendentals=b * hp,
        bytes_accessed=(b * k * 4 + k * hp * 2 + hp * 4
                        + hp * n * 2 + n * 4 + b * n * 4),
    )

    out = pl.pallas_call(
        _mlp_kernel,
        out_shape=jax.ShapeDtypeStruct((b, n), jnp.float32),
        grid=(n_steps,),
        in_specs=[
            pl.BlockSpec((tb, k), lambda i: (i, 0)),   # x: tiled over batch, K unpadded
            pl.BlockSpec((k, hp), lambda i: (0, 0)),   # W1: resident
            pl.BlockSpec((1, hp), lambda i: (0, 0)),   # b1: resident
            pl.BlockSpec((hp, n), lambda i: (0, 0)),   # W2: resident
            pl.BlockSpec((1, n), lambda i: (0, 0)),    # b2: resident
        ],
        # Unpadded-N output (masked store) -> 16x fewer write bytes at N=8.
        # On v5e prefer a lane-dense (tb, round_up(n,128)) output instead.
        out_specs=pl.BlockSpec((tb, n), lambda i: (i, 0)),
        compiler_params=pltpu.CompilerParams(
            dimension_semantics=("parallel",)),
        cost_estimate=cost,
    )(x.astype(jnp.float32), w1_p, b1_p, w2_p, b2_p)
    return out


def init_params(key, num_input, num_hidden, num_output):
    """Deterministic init matching PyTorch nn.Linear's U(-1/sqrt(fan_in), +).
    Weights stored as (in, out) -- transpose of PyTorch's (out, in) layout."""
    k1, k2, k3, k4 = jax.random.split(key, 4)
    bound1 = 1.0 / jnp.sqrt(num_input)
    bound2 = 1.0 / jnp.sqrt(num_hidden)
    w1 = jax.random.uniform(k1, (num_input, num_hidden), jnp.float32,
                            -bound1, bound1)
    b1 = jax.random.uniform(k2, (1, num_hidden), jnp.float32, -bound1, bound1)
    w2 = jax.random.uniform(k3, (num_hidden, num_output), jnp.float32,
                            -bound2, bound2)
    b2 = jax.random.uniform(k4, (1, num_output), jnp.float32, -bound2, bound2)
    return w1, b1, w2, b2


if __name__ == "__main__":
    num_input, num_hidden, num_output = 16, 32, 8
    batch = 4

    key = jax.random.PRNGKey(0)
    kx, kp = jax.random.split(key)
    x = jax.random.normal(kx, (batch, num_input), jnp.float32)
    w1, b1, w2, b2 = init_params(kp, num_input, num_hidden, num_output)

    params = prepare_params(w1, b1, w2, b2)        # one-time pad/cast (hoisted)
    out = module_net_forward(x, params)
    jax.block_until_ready(out)
    assert out.shape == (batch, num_output), out.shape

    # Reference 1: same bf16 quantization of MXU operands (tight tolerance).
    q = lambda a: a.astype(jnp.bfloat16).astype(jnp.float32)
    h_ref = jnp.tanh(q(x) @ q(w1) + b1)
    ref_bf16 = q(h_ref) @ q(w2) + b2
    assert jnp.allclose(out, ref_bf16, atol=2e-3, rtol=2e-3), (
        "max |err| vs bf16 ref:", float(jnp.max(jnp.abs(out - ref_bf16))))

    # Reference 2: full-f32 math (loose tolerance covering bf16 quantization).
    ref_f32 = jnp.tanh(x @ w1 + b1) @ w2 + b2
    assert jnp.allclose(out, ref_f32, atol=5e-2, rtol=5e-2), (
        "max |err| vs f32 ref:", float(jnp.max(jnp.abs(out - ref_f32))))

    print("KERNEL_OK")
</pallas_src>

<mosaic_0001>
module attributes {stable_mosaic.version = 11 : i64} {
  func.func @_mlp_kernel(%arg0: i32, %arg1: memref<8x16xf32, #tpu.memory_space<vmem>>, %arg2: memref<16x128xbf16, #tpu.memory_space<vmem>>, %arg3: memref<1x128xf32, #tpu.memory_space<vmem>>, %arg4: memref<128x8xbf16, #tpu.memory_space<vmem>>, %arg5: memref<1x8xf32, #tpu.memory_space<vmem>>, %arg6: memref<8x8xf32, #tpu.memory_space<vmem>>) attributes {dimension_semantics = [#tpu.dimension_semantics<parallel>], iteration_bounds = array<i64: 1>, scalar_prefetch = 0 : i64, scratch_operands = 0 : i64, tpu.core_type = #tpu.core_type<tc>, window_params = [{transform_indices = @transform_0, window_bounds = array<i64: 8, 16>}, {pipeline_mode = #tpu.pipeline_mode<synchronous>, transform_indices = @transform_1, window_bounds = array<i64: 16, 128>}, {pipeline_mode = #tpu.pipeline_mode<synchronous>, transform_indices = @transform_2, window_bounds = array<i64: 1, 128>}, {pipeline_mode = #tpu.pipeline_mode<synchronous>, transform_indices = @transform_3, window_bounds = array<i64: 128, 8>}, {pipeline_mode = #tpu.pipeline_mode<synchronous>, transform_indices = @transform_4, window_bounds = array<i64: 1, 8>}, {transform_indices = @transform_5, window_bounds = array<i64: 8, 8>}]} {
    %c0 = arith.constant 0 : index
    %c0_0 = arith.constant 0 : index
    %0 = vector.load %arg1[%c0, %c0_0] : memref<8x16xf32, #tpu.memory_space<vmem>>, vector<8x16xf32>
    %1 = arith.truncf %0 : vector<8x16xf32> to vector<8x16xbf16>
    %c0_1 = arith.constant 0 : index
    %c0_2 = arith.constant 0 : index
    %2 = vector.load %arg2[%c0_1, %c0_2] : memref<16x128xbf16, #tpu.memory_space<vmem>>, vector<16x128xbf16>
    %cst = arith.constant dense<0.000000e+00> : vector<8x128xf32>
    %3 = tpu.matmul %1, %2, %cst {dimension_numbers = #tpu.dot_dimension_numbers<[1], [0], [0], [1], [0, 0, 1, 1], [], []>} : vector<8x16xbf16>, vector<16x128xbf16>, vector<8x128xf32> -> vector<8x128xf32>
    %c0_3 = arith.constant 0 : index
    %c0_4 = arith.constant 0 : index
    %4 = vector.load %arg3[%c0_3, %c0_4] : memref<1x128xf32, #tpu.memory_space<vmem>>, vector<1x128xf32>
    %5 = vector.broadcast %4 : vector<1x128xf32> to vector<8x128xf32>
    %6 = arith.addf %3, %5 : vector<8x128xf32>
    %7 = math.tanh %6 : vector<8x128xf32>
    %8 = arith.truncf %7 : vector<8x128xf32> to vector<8x128xbf16>
    %c0_5 = arith.constant 0 : index
    %c0_6 = arith.constant 0 : index
    %9 = vector.load %arg4[%c0_5, %c0_6] : memref<128x8xbf16, #tpu.memory_space<vmem>>, vector<128x8xbf16>
    %cst_7 = arith.constant dense<0.000000e+00> : vector<8x8xf32>
    %10 = tpu.matmul %8, %9, %cst_7 {dimension_numbers = #tpu.dot_dimension_numbers<[1], [0], [0], [1], [0, 0, 1, 1], [], []>} : vector<8x128xbf16>, vector<128x8xbf16>, vector<8x8xf32> -> vector<8x8xf32>
    %c0_8 = arith.constant 0 : index
    %c0_9 = arith.constant 0 : index
    %11 = vector.load %arg5[%c0_8, %c0_9] : memref<1x8xf32, #tpu.memory_space<vmem>>, vector<1x8xf32>
    %12 = vector.broadcast %11 : vector<1x8xf32> to vector<8x8xf32>
    %13 = arith.addf %10, %12 : vector<8x8xf32>
    %c0_10 = arith.constant 0 : index
    %c0_11 = arith.constant 0 : index
    %14 = vector.load %arg6[%c0_10, %c0_11] : memref<8x8xf32, #tpu.memory_space<vmem>>, vector<8x8xf32>
    tpu.vector_store %arg6[%c0_10, %c0_11], %13 {strides = array<i32>} : memref<8x8xf32, #tpu.memory_space<vmem>>, vector<8x8xf32>,
    return
  }
  func.func @transform_0(%arg0: i32) -> (i32, i32) {
    %c0_i32 = arith.constant 0 : i32
    %c0_i32_0 = arith.constant 0 : i32
    return %arg0, %c0_i32 : i32, i32
  }
  func.func @transform_1(%arg0: i32) -> (i32, i32) {
    %c0_i32 = arith.constant 0 : i32
    %c0_i32_0 = arith.constant 0 : i32
    %c0_i32_1 = arith.constant 0 : i32
    return %c0_i32, %c0_i32_0 : i32, i32
  }
  func.func @transform_2(%arg0: i32) -> (i32, i32) {
    %c0_i32 = arith.constant 0 : i32
    %c0_i32_0 = arith.constant 0 : i32
    %c0_i32_1 = arith.constant 0 : i32
    return %c0_i32, %c0_i32_0 : i32, i32
  }
  func.func @transform_3(%arg0: i32) -> (i32, i32) {
    %c0_i32 = arith.constant 0 : i32
    %c0_i32_0 = arith.constant 0 : i32
    %c0_i32_1 = arith.constant 0 : i32
    return %c0_i32, %c0_i32_0 : i32, i32
  }
  func.func @transform_4(%arg0: i32) -> (i32, i32) {
    %c0_i32 = arith.constant 0 : i32
    %c0_i32_0 = arith.constant 0 : i32
    %c0_i32_1 = arith.constant 0 : i32
    return %c0_i32, %c0_i32_0 : i32, i32
  }
  func.func @transform_5(%arg0: i32) -> (i32, i32) {
    %c0_i32 = arith.constant 0 : i32
    %c0_i32_0 = arith.constant 0 : i32
    return %arg0, %c0_i32 : i32, i32
  }
}

</mosaic_0001>

<bundles_post_ra>
// kernel: tpu_custom_call.1
= control target key start
LH: loop header
LB: loop body
LE: loop exit
PB: predicated region body
PF: predicated region fallthrough
CT: control target
= control target key end

     0   :  { %10 = vsyncpa [#allocation3], 0  ;;  %v303_v1 = vmov 0.0   ;;  %vm39_vm0 = vcmask 130048   ;;  %vm304_vm1 = vmmov 0   ;;  %vm196_vm2 = vcmask 64512   ;;  %s386_s0 = inlined_call_operand.vmem [shape: f32[4,16], index: 0, kind: input, shape index: {}]   ;;  %s387_s1 = inlined_call_operand.vmem [shape: bf16[16,128], index: 1, kind: input, shape index: {}]   ;;  %s388_s2 = inlined_call_operand.vmem [shape: f32[1,128], index: 2, kind: input, shape index: {}]   ;;  %s389_s3 = inlined_call_operand.vmem [shape: bf16[128,8], index: 3, kind: input, shape index: {}]   ;;  %s390_s4 = inlined_call_operand.vmem [shape: f32[1,8], index: 4, kind: input, shape index: {}]   ;;  %s391_s5 = inlined_call_operand.hbm [shape: f32[4,8], index: 5, kind: output, shape index: {}]  }
   0x1   :  { %v268_v0 = vld [vmem:[%s387_s1] sm:$0xff]   ;;  %237 = vmatprep.subr.bf16.mxu0 %v303_v1  ;;  %243 = vmatprep.subr.bf16.mxu1 %v303_v1  ;;  %v270_v5 = vld [vmem:[%s389_s3 + $0x8] sm:$0xff]   ;;  %v271_v6 = vld [vmem:[%s389_s3 + $0x10] sm:$0xff]  }
   0x2   :  { %v22_v2 = vld [vmem:[%s386_s0] sm:$0xff]  ;;  %238 = vmatpush3.bf16.msra.mxu0 %v268_v0  ;;  %239 = vmatprep.mubr.msk.bf16.mxu0 %vm304_vm1, %v303_v1  ;;  %v272_v7 = vld [vmem:[%s389_s3 + $0x18] sm:$0xff]   ;;  %v274_v9 = vld [vmem:[%s389_s3 + $0x28] sm:$0xff]  }
   0x3   :  { %v269_v3 = vld [vmem:[%s389_s3] sm:$0xff]   ;;  %v23_v4 = vpack.c.bf16 %v22_v2, %v22_v2  ;;  %259 = vmatprep.mubr.msk.bf16.mxu1 %vm304_vm1, %v303_v1  ;;  %v275_v10 = vld [vmem:[%s389_s3 + $0x30] sm:$0xff]   ;;  %v276_v11 = vld [vmem:[%s389_s3 + $0x38] sm:$0xff]  }
   0x4   :  { %244 = vmatpush3.bf16.msra.mxu1 %v269_v3  ;;  %v273_v8 = vld [vmem:[%s389_s3 + $0x20] sm:$0xff]  }
   0x5   :  { %245 = vmatprep.subr.bf16.mxu1 %v303_v1  ;;  %240 = vmatmul.mubr.msk.bf16.vlgmr.msra.gmra.mrb[0].mxu0 %vm39_vm0, %v23_v4  ;;  %v214_v12 = vld [vmem:[%s388_s2] ss:$0 sm:$0xff] }
   0x6   :  { %v217_v20 = vld [vmem:[%s390_s4] ss:$0 sm:$0xff] }
   0x8   :  { %246 = vmatpush3.bf16.msra.mxu1 %v270_v5 }
   0x9   :  { %247 = vmatprep.subr.bf16.mxu1 %v303_v1 }
   0xc   :  { %248 = vmatpush3.bf16.msra.mxu1 %v271_v6 }
   0xd   :  { %249 = vmatprep.subr.bf16.mxu1 %v303_v1 }
  0x10   :  { %250 = vmatpush3.bf16.msra.mxu1 %v272_v7 }
  0x11   :  { %251 = vmatprep.subr.bf16.mxu1 %v303_v1 }
  0x14   :  { %252 = vmatpush3.bf16.msra.mxu1 %v273_v8 }
  0x15   :  { %253 = vmatprep.subr.bf16.mxu1 %v303_v1 }
  0x18   :  { %254 = vmatpush3.bf16.msra.mxu1 %v274_v9 }
  0x19   :  { %255 = vmatprep.subr.bf16.mxu1 %v303_v1 }
  0x1c   :  { %256 = vmatpush3.bf16.msra.mxu1 %v275_v10 }
  0x1d   :  { %257 = vmatprep.subr.bf16.mxu1 %v303_v1 }
  0x20   :  { %258 = vmatpush3.bf16.msra.mxu1 %v276_v11 }
  0xd8   :  { %v77_v13 = vpop.f32.mrb[0].mxu0 }
  0xd9   :  { %v78_v14 = vadd.f32 %v214_v12, %v77_v13  ;;  %v241_v15 = vpop.f32.mrb[1].mxu0 }
  0xda   :  { %v80_v16 = vpop.f32.mrb[2].mxu0 }
  0xdb   :  { %277 = vtanh.f32 %v78_v14  ;;  %v242_v17 = vpop.f32.mrb[3].mxu0 }
  0xe5   :  { %v278_v18 = vpop.eup %277 }
  0xe6   :  { %v84_v19 = vpack.c.bf16 %v278_v18, %v278_v18 }
  0xe8   :  { %260 = vmatmul.mubr.bf16.vlgmr.msra.gmra.mrb[0].mxu1 %v84_v19 }
 0x1bb   :  { %v190_v21 = vpop.f32.mrb[0].mxu1 }
 0x1bc   :  { %v191_v22 = vadd.f32 %v217_v20, %v190_v21  ;;  %v261_v23 = vpop.f32.mrb[1].mxu1 }
 0x1bd   :  { %v193_v24 = vpop.f32.mrb[2].mxu1 }
 0x1be   :  { %197 = vst.msk [vmem:[#allocation2] sm:$0xff] %vm196_vm2, %v191_v22  ;;  %v262_v25 = vpop.f32.mrb[3].mxu1 }
 0x1bf   :  { %202 = vsyncadd [#allocation3], 64  ;;  %s305_s2 = smov [#allocation2]  }
 0x1c0   :  { %s203_s3 = sshll.u32 %s305_s2, 4  ;;  %s204_s3 = int_to_ptr.vmem [resolvable:$true] %s203_s3 }
 0x1c1   :  { %s279_s15 = scalar_lea.vmem %s204_s3, 64  ;;  %s283_s16 = scalar_lea.vmem %s204_s3, 128 }
 0x1c2   :  { %p280_p0 = scmp.ne.s32.totalorder %s204_s3, %s279_s15  ;;  %p284_p1 = scmp.lt.s32.totalorder %s204_s3, %s204_s3 }
 0x1c3   :  { %p285_p2 = scmp.lt.s32.totalorder %s283_s16, %s279_s15 }
 0x1c5   :  { %p286_p3 = por %p285_p2, %p284_p1 }
 0x1c7   :  { %p287_p4 = pnand %p286_p3, %p280_p0 }
 0x1c9   :  { %290 = shalt.err (!%p287_p4)
}
 0x1ca   :  { %s291_s18 = scalar_lea.hbm %s391_s5, 64 }
 0x1cb   :  { %p292_p5 = scmp.ne.s32.totalorder %s391_s5, %s291_s18  ;;  %p295_p6 = scmp.lt.u32.totalorder %s291_s18, %s391_s5 }
 0x1cd   :  { %p297_p7 = pnand %p295_p6, %p292_p5 }
 0x1cf   :  { %300 = shalt.err (!%p297_p7)
}
 0x1d0   :  { %s306_s23 = smov 64   ;;  %s307_s24 = smov 4  }
 0x1d1   :  { %209 = dma.vmem_to_hbm [thread:$0]  %s204_s3, 64, %s391_s5, [#allocation3], %s306_s23, %s306_s23, %s307_s24  }
 0x1d2   :  { %301 = dma.done.wait [#allocation3], 128  }
 0x1d3   :  { %302 = vsyncadd [#allocation3], 4294967168 }
 0x1d4   :  { %213 = vsyncpa [#allocation3], 1 }

</bundles_post_ra>
